<compile_context>
chip_gen: v7x
topology: tpu7x:2x2x1
jax: 0.10.0
libtpu: 0.0.40
codegen_flags: <defaults>
</compile_context>

<pallas_src>
import math

import jax
import jax.numpy as jnp
from jax.experimental import pallas as pl
from jax.experimental.pallas import tpu as pltpu

_LANES = 128


def _round_up(x, m):
    return ((x + m - 1) // m) * m


def _pick_tile(total, max_tile):
    """Largest multiple-of-128 divisor of `total` (a multiple of 128), <= max_tile."""
    t = max(_LANES, (min(max_tile, total) // _LANES) * _LANES)
    while total % t:
        t -= _LANES
    return t


def _vmem_limit_bytes():
    # ~3/4 of physical VMEM: 96 MiB on v5e/v6e (128 MiB), 48 MiB on v7x (64 MiB).
    try:
        phys = pltpu.get_tpu_info().vmem_capacity_bytes
    except Exception:
        phys = 64 << 20  # conservative (v7x-sized) fallback
    return int(min(96 << 20, (phys * 3) // 4))


def _support_kernel(x_ref, w_ref, o_ref):
    # support = X @ W : bf16 MXU feeds, f32 accumulation, bf16 lane-dense store.
    o_ref[...] = jnp.dot(
        x_ref[...], w_ref[...], preferred_element_type=jnp.float32
    ).astype(o_ref.dtype)


def _aggregate_kernel(adj_ref, s_ref, b_ref, out_ref):
    # out[row_block] = sum_k A[row_block, k_block] @ support[k_block] + bias
    # The f32 output block is revisited across the K axis (same block index),
    # so initialize it with the bias at k == 0 and accumulate in place.
    @pl.when(pl.program_id(1) == 0)
    def _():
        out_ref[...] = jnp.broadcast_to(b_ref[...], out_ref.shape)

    out_ref[...] += jnp.dot(
        adj_ref[...], s_ref[...], preferred_element_type=jnp.float32
    )


def gcn_forward(x, weight, adjacency, bias=None, *, row_block=1024, col_block=1024):
    """Fused GCN layer: adjacency @ (x @ weight) + bias.

    bf16 MXU feeds with f32 accumulation; lane-dense (128-padded) output columns;
    (row, K)-tiled adjacency stream with an in-place f32 output accumulator.
    """
    n, d_in = x.shape
    d_out = weight.shape[1]

    d_out_p = _round_up(d_out, _LANES)   # lane-dense output columns
    n_p = _round_up(n, _LANES)           # pad node count (both adjacency axes)
    tm = _pick_tile(n_p, row_block)      # adjacency row tile (parallel axis)
    tk = _pick_tile(n_p, col_block)      # adjacency column tile (reduction axis)

    vmem_limit = _vmem_limit_bytes()

    # ---- bf16 MXU feeds, padded directly in bf16 (no intermediate f32 copies). ----
    x_bf = x.astype(jnp.bfloat16)
    if n_p != n:
        x_bf = jnp.zeros((n_p, d_in), jnp.bfloat16).at[:n, :].set(x_bf)

    w_bf = weight.astype(jnp.bfloat16)
    if d_out_p != d_out:
        w_bf = jnp.zeros((d_in, d_out_p), jnp.bfloat16).at[:, :d_out].set(w_bf)

    adj_bf = adjacency.astype(jnp.bfloat16)
    if n_p != n:
        adj_bf = jnp.zeros((n_p, n_p), jnp.bfloat16).at[:n, :n].set(adj_bf)

    b_p = jnp.zeros((1, d_out_p), jnp.float32)
    if bias is not None:
        b_p = b_p.at[0, :d_out].set(bias.astype(jnp.float32))

    # ---- support = X @ W, computed once (hoisted out of the adjacency loop). ----
    support = pl.pallas_call(
        _support_kernel,
        out_shape=jax.ShapeDtypeStruct((n_p, d_out_p), jnp.bfloat16),
        grid=(n_p // tk,),
        in_specs=[
            pl.BlockSpec((tk, d_in), lambda i: (i, 0)),
            pl.BlockSpec((d_in, d_out_p), lambda i: (0, 0)),
        ],
        out_specs=pl.BlockSpec((tk, d_out_p), lambda i: (i, 0)),
        compiler_params=pltpu.CompilerParams(
            dimension_semantics=("parallel",),
            vmem_limit_bytes=vmem_limit,
        ),
        cost_estimate=pl.CostEstimate(
            flops=2 * n_p * d_in * d_out_p,
            transcendentals=0,
            bytes_accessed=2 * (n_p * d_in + d_in * d_out_p + n_p * d_out_p),
        ),
    )(x_bf, w_bf)

    # ---- out = adjacency @ support + bias : (rows parallel) x (K reduction). ----
    g_rows, g_k = n_p // tm, n_p // tk
    cost = pl.CostEstimate(
        flops=2 * n_p * n_p * d_out_p,
        transcendentals=0,
        bytes_accessed=(
            2 * n_p * n_p                   # bf16 adjacency stream (dominant)
            + 2 * g_rows * n_p * d_out_p    # bf16 support, re-streamed per row block
            + 4 * d_out_p                   # f32 bias
            + 4 * n_p * d_out_p             # f32 output
        ),
    )

    out_p = pl.pallas_call(
        _aggregate_kernel,
        out_shape=jax.ShapeDtypeStruct((n_p, d_out_p), jnp.float32),
        grid=(g_rows, g_k),
        in_specs=[
            pl.BlockSpec((tm, tk), lambda i, k: (i, k)),        # adjacency tile
            pl.BlockSpec((tk, d_out_p), lambda i, k: (k, 0)),   # support K-slice
            pl.BlockSpec((1, d_out_p), lambda i, k: (0, 0)),    # bias (constant, tiny)
        ],
        out_specs=pl.BlockSpec((tm, d_out_p), lambda i, k: (i, 0)),
        compiler_params=pltpu.CompilerParams(
            dimension_semantics=("parallel", "arbitrary"),
            vmem_limit_bytes=vmem_limit,
        ),
        cost_estimate=cost,
    )(adj_bf, support, b_p)

    return out_p[:n, :d_out]


def _kaiming_uniform(key, shape):
    # Mirrors torch.nn.init.kaiming_uniform_ defaults (a=0, fan_in, leaky_relu gain).
    fan_in = shape[1]
    gain = math.sqrt(2.0)
    bound = gain * math.sqrt(3.0 / fan_in)
    return jax.random.uniform(key, shape, jnp.float32, minval=-bound, maxval=bound)


def _make_normalized_adjacency(key, n):
    # Random symmetric adjacency with self-loops, then D^-1/2 A D^-1/2.
    a = (jax.random.uniform(key, (n, n)) < 0.1).astype(jnp.float32)
    a = jnp.maximum(a, a.T)
    a = a + jnp.eye(n, dtype=jnp.float32)
    deg = a.sum(axis=1)
    d_inv_sqrt = 1.0 / jnp.sqrt(deg)
    return a * d_inv_sqrt[:, None] * d_inv_sqrt[None, :]


if __name__ == "__main__":
    # Small, module-consistent shapes: N nodes, input_dim -> output_dim.
    N, INPUT_DIM, OUTPUT_DIM = 128, 64, 32

    key = jax.random.PRNGKey(0)
    k_x, k_w, k_adj = jax.random.split(key, 3)

    x = jax.random.normal(k_x, (N, INPUT_DIM), dtype=jnp.float32)
    weight = _kaiming_uniform(k_w, (INPUT_DIM, OUTPUT_DIM))
    bias = jnp.zeros((OUTPUT_DIM,), dtype=jnp.float32)  # init.zeros_
    adjacency = _make_normalized_adjacency(k_adj, N)

    out = gcn_forward(x, weight, adjacency, bias)
    out = jax.block_until_ready(out)
    assert out.shape == (N, OUTPUT_DIM)

    # Pure-f32 JAX reference; tolerance loosened for the bf16 MXU input feeds.
    ref_f32 = adjacency @ (x @ weight) + bias[None, :]
    assert jnp.allclose(out, ref_f32, atol=5e-2, rtol=5e-2), "mismatch vs f32 reference"

    # Tighter check against a reference mirroring the kernel's bf16 feed order
    # (f32-accumulated support, cast to bf16, then f32-accumulated aggregation).
    support_bf = jnp.dot(
        x.astype(jnp.bfloat16), weight.astype(jnp.bfloat16),
        preferred_element_type=jnp.float32,
    ).astype(jnp.bfloat16)
    ref_bf = jnp.dot(
        adjacency.astype(jnp.bfloat16), support_bf,
        preferred_element_type=jnp.float32,
    ) + bias[None, :]
    assert jnp.allclose(out, ref_bf, atol=1e-3, rtol=1e-3), "mismatch vs bf16 reference"

    print("KERNEL_OK")
</pallas_src>

<mosaic_0001>
module attributes {stable_mosaic.version = 11 : i64} {
  func.func @_support_kernel(%arg0: i32, %arg1: memref<128x64xbf16, #tpu.memory_space<vmem>>, %arg2: memref<64x128xbf16, #tpu.memory_space<vmem>>, %arg3: memref<128x128xbf16, #tpu.memory_space<vmem>>) attributes {dimension_semantics = [#tpu.dimension_semantics<parallel>], iteration_bounds = array<i64: 1>, scalar_prefetch = 0 : i64, scratch_operands = 0 : i64, tpu.core_type = #tpu.core_type<tc>, window_params = [{transform_indices = @transform_0, window_bounds = array<i64: 128, 64>}, {pipeline_mode = #tpu.pipeline_mode<synchronous>, transform_indices = @transform_1, window_bounds = array<i64: 64, 128>}, {transform_indices = @transform_2, window_bounds = array<i64: 128, 128>}]} {
    %c0 = arith.constant 0 : index
    %c0_0 = arith.constant 0 : index
    %0 = vector.load %arg1[%c0, %c0_0] : memref<128x64xbf16, #tpu.memory_space<vmem>>, vector<128x64xbf16>
    %c0_1 = arith.constant 0 : index
    %c0_2 = arith.constant 0 : index
    %1 = vector.load %arg2[%c0_1, %c0_2] : memref<64x128xbf16, #tpu.memory_space<vmem>>, vector<64x128xbf16>
    %cst = arith.constant dense<0.000000e+00> : vector<128x128xf32>
    %2 = tpu.matmul %0, %1, %cst {dimension_numbers = #tpu.dot_dimension_numbers<[1], [0], [0], [1], [0, 0, 1, 1], [], []>} : vector<128x64xbf16>, vector<64x128xbf16>, vector<128x128xf32> -> vector<128x128xf32>
    %3 = arith.truncf %2 : vector<128x128xf32> to vector<128x128xbf16>
    %c0_3 = arith.constant 0 : index
    %c0_4 = arith.constant 0 : index
    %4 = vector.load %arg3[%c0_3, %c0_4] : memref<128x128xbf16, #tpu.memory_space<vmem>>, vector<128x128xbf16>
    tpu.vector_store %arg3[%c0_3, %c0_4], %3 {strides = array<i32>} : memref<128x128xbf16, #tpu.memory_space<vmem>>, vector<128x128xbf16>,
    return
  }
  func.func @transform_0(%arg0: i32) -> (i32, i32) {
    %c0_i32 = arith.constant 0 : i32
    %c0_i32_0 = arith.constant 0 : i32
    return %arg0, %c0_i32 : i32, i32
  }
  func.func @transform_1(%arg0: i32) -> (i32, i32) {
    %c0_i32 = arith.constant 0 : i32
    %c0_i32_0 = arith.constant 0 : i32
    %c0_i32_1 = arith.constant 0 : i32
    return %c0_i32, %c0_i32_0 : i32, i32
  }
  func.func @transform_2(%arg0: i32) -> (i32, i32) {
    %c0_i32 = arith.constant 0 : i32
    %c0_i32_0 = arith.constant 0 : i32
    return %arg0, %c0_i32 : i32, i32
  }
}

</mosaic_0001>

<bundles_post_ra>
// kernel: tpu_custom_call.1
= control target key start
LH: loop header
LB: loop body
LE: loop exit
PB: predicated region body
PF: predicated region fallthrough
CT: control target
= control target key end

     0   :  { %vm101_vm0 = vcmask 523264   ;;  %s575_s0 = inlined_call_operand.vmem [shape: bf16[128,64], index: 0, kind: input, shape index: {}]   ;;  %s576_s1 = inlined_call_operand.vmem [shape: bf16[64,128], index: 1, kind: input, shape index: {}]   ;;  %s577_s2 = inlined_call_operand.hbm [shape: bf16[128,128], index: 2, kind: output, shape index: {}]  }
   0x1   :  { %v465_v0 = vld [vmem:[%s576_s1] sm:$0xff]   ;;  %v466_v1 = vld [vmem:[%s576_s1 + $0x8] sm:$0xff]   ;;  %v467_v2 = vld [vmem:[%s576_s1 + $0x10] sm:$0xff]  }
   0x2   :  { %430 = vmatprep.subr.bf16.mxu0 %v465_v0  ;;  %454 = vmatprep.subr.bf16.mxu1 %v465_v0  ;;  %v469_v3 = vld [vmem:[%s575_s0] sm:$0xff]   ;;  %v468_v5 = vld [vmem:[%s576_s1 + $0x18] sm:$0xff]  }
   0x3   :  { %431 = vmatpush3.bf16.msra.mxu0 %v465_v0  ;;  %458 = vmatpush3.bf16.msra.mxu1 %v465_v0  ;;  %v470_v4 = vld [vmem:[%s575_s0 + $0x20] sm:$0xff]  }
   0x4   :  { %432 = vmatprep.subr.bf16.mxu0 %v466_v1  ;;  %455 = vmatprep.subr.bf16.mxu1 %v466_v1 }
   0x5   :  { %438 = vmatprep.mubr.msk.bf16.mxu0 %vm101_vm0, %v469_v3  ;;  %446 = vmatprep.mubr.msk.bf16.mxu1 %vm101_vm0, %v470_v4 }
   0x7   :  { %433 = vmatpush3.bf16.msra.mxu0 %v466_v1  ;;  %459 = vmatpush3.bf16.msra.mxu1 %v466_v1 }
   0x8   :  { %434 = vmatprep.subr.bf16.mxu0 %v467_v2  ;;  %456 = vmatprep.subr.bf16.mxu1 %v467_v2 }
   0xb   :  { %435 = vmatpush3.bf16.msra.mxu0 %v467_v2  ;;  %460 = vmatpush3.bf16.msra.mxu1 %v467_v2 }
   0xc   :  { %436 = vmatprep.subr.bf16.mxu0 %v468_v5  ;;  %457 = vmatprep.subr.bf16.mxu1 %v468_v5 }
   0xd   :  { %7 = vsyncpa [#allocation3], 0  ;;  %v471_v6 = vld [vmem:[%s575_s0 + $0x8] sm:$0xff]   ;;  %v473_v8 = vld [vmem:[%s575_s0 + $0x10] sm:$0xff]  }
   0xe   :  { %v472_v7 = vld [vmem:[%s575_s0 + $0x28] sm:$0xff]   ;;  %v474_v9 = vld [vmem:[%s575_s0 + $0x30] sm:$0xff]   ;;  %v475_v10 = vld [vmem:[%s575_s0 + $0x18] sm:$0xff]  }
   0xf   :  { %437 = vmatpush3.bf16.msra.mxu0 %v468_v5  ;;  %461 = vmatpush3.bf16.msra.mxu1 %v468_v5  ;;  %v476_v11 = vld [vmem:[%s575_s0 + $0x38] sm:$0xff]   ;;  %s501_s0 = smov [#allocation2]  }
  0x10   :  { %s308_s4 = sshll.u32 %s501_s0, 4  ;;  %s309_s4 = int_to_ptr.vmem [resolvable:$true] %s308_s4 }
  0x11   :  { %s477_s5 = scalar_lea.vmem %s309_s4, 1024  ;;  %p482_p1 = scmp.lt.s32.totalorder %s309_s4, %s309_s4 }
  0x12   :  { %439 = vmatmul.mubr.msk.bf16.vlgmr.msra.gmra.mrb[0].mxu0 %vm101_vm0, %v471_v6  ;;  %447 = vmatmul.mubr.msk.bf16.vlgmr.msra.gmra.mrb[0].mxu1 %vm101_vm0, %v472_v7  ;;  %p478_p0 = scmp.ne.s32.totalorder %s309_s4, %s477_s5  ;;  %p483_p2 = scmp.lt.s32.totalorder %s477_s5, %s477_s5 }
  0x13   :  { %442 = vmatprep.mubr.msk.bf16.mxu0 %vm101_vm0, %v473_v8  ;;  %450 = vmatprep.mubr.msk.bf16.mxu1 %vm101_vm0, %v474_v9 }
  0x14   :  { %p484_p3 = por %p483_p2, %p482_p1 }
  0x16   :  { %p485_p4 = pnand %p484_p3, %p478_p0 }
  0x1a   :  { %443 = vmatmul.mubr.msk.bf16.gmra.mrb[4].mxu0 %vm101_vm0, %v475_v10  ;;  %451 = vmatmul.mubr.msk.bf16.gmra.mrb[4].mxu1 %vm101_vm0, %v476_v11 }
  0xe5   :  { %v440_v12 = vpop.f32.mrb[0].mxu0  ;;  %v448_v13 = vpop.f32.mrb[0].mxu1 }
  0xe6   :  { %v160_v14 = vpop.f32.mrb[1].mxu0  ;;  %v192_v15 = vpop.f32.mrb[1].mxu1 }
  0xe7   :  { %v441_v16 = vpop.f32.mrb[2].mxu0  ;;  %v449_v17 = vpop.f32.mrb[2].mxu1 }
  0xe8   :  { %v379_v18 = vpack.c.bf16 %v441_v16, %v440_v12  ;;  %v399_v19 = vpack.c.bf16 %v449_v17, %v448_v13  ;;  %v163_v20 = vpop.f32.mrb[3].mxu0  ;;  %v195_v21 = vpop.f32.mrb[3].mxu1 }
  0xe9   :  { %v374_v22 = vpack.c.bf16 %v163_v20, %v160_v14  ;;  %v394_v23 = vpack.c.bf16 %v195_v21, %v192_v15 }
  0xea   :  { %411 = vst [vmem:[#allocation2 + $0x8] sm:$0xff] %v379_v18   ;;  %415 = vst [vmem:[#allocation2 + $0x28] sm:$0xff] %v399_v19  }
  0xeb   :  { %375 = vst [vmem:[#allocation2] sm:$0xff] %v374_v22   ;;  %414 = vst [vmem:[#allocation2 + $0x20] sm:$0xff] %v394_v23  }
  0xed   :  { %v444_v24 = vpop.f32.mrb[4].mxu0  ;;  %v452_v25 = vpop.f32.mrb[4].mxu1 }
  0xee   :  { %v176_v26 = vpop.f32.mrb[5].mxu0  ;;  %v208_v27 = vpop.f32.mrb[5].mxu1 }
  0xef   :  { %v445_v28 = vpop.f32.mrb[6].mxu0  ;;  %v453_v29 = vpop.f32.mrb[6].mxu1 }
  0xf0   :  { %v389_v30 = vpack.c.bf16 %v445_v28, %v444_v24  ;;  %v409_v31 = vpack.c.bf16 %v453_v29, %v452_v25  ;;  %v179_v32 = vpop.f32.mrb[7].mxu0  ;;  %v211_v33 = vpop.f32.mrb[7].mxu1 }
  0xf1   :  { %v384_v34 = vpack.c.bf16 %v179_v32, %v176_v26  ;;  %v404_v35 = vpack.c.bf16 %v211_v33, %v208_v27 }
  0xf2   :  { %413 = vst [vmem:[#allocation2 + $0x18] sm:$0xff] %v389_v30   ;;  %417 = vst [vmem:[#allocation2 + $0x38] sm:$0xff] %v409_v31  }
  0xf3   :  { %412 = vst [vmem:[#allocation2 + $0x10] sm:$0xff] %v384_v34   ;;  %416 = vst [vmem:[#allocation2 + $0x30] sm:$0xff] %v404_v35  }
  0xf4   :  { %488 = shalt.err (!%p485_p4)
}
  0xf5   :  { %s489_s8 = scalar_lea.hbm %s577_s2, 1024 }
  0xf6   :  { %p490_p5 = scmp.ne.s32.totalorder %s577_s2, %s489_s8  ;;  %p493_p6 = scmp.lt.u32.totalorder %s489_s8, %s577_s2 }
  0xf8   :  { %p495_p7 = pnand %p493_p6, %p490_p5 }
  0xfa   :  { %498 = shalt.err (!%p495_p7)
}
  0xfb   :  { %s502_s13 = smov 64   ;;  %s503_s14 = smov 4  }
  0xfc   :  { %314 = dma.vmem_to_hbm [thread:$0]  %s309_s4, 1024, %s577_s2, [#allocation3], %s502_s13, %s502_s13, %s503_s14  }
  0xfd   :  { %499 = dma.done.wait [#allocation3], 1024  }
  0xfe   :  { %500 = vsyncadd [#allocation3], 4294966272 }
  0xff   :  { %318 = vsyncpa [#allocation3], 1 }

</bundles_post_ra>
